<compile_context>
chip_gen: v7x
topology: tpu7x:2x2x1
jax: 0.10.0
libtpu: 0.0.40
codegen_flags: <defaults>
</compile_context>

<pallas_src>
import functools
import math
import re

import jax
import jax.numpy as jnp
from jax import lax
from jax.experimental import pallas as pl
from jax.experimental.pallas import tpu as pltpu

NEG_SLOPE = 0.01          # nn.LeakyReLU default negative_slope
BN_EPS = 1e-5


def _round_up(x, m):
    return ((x + m - 1) // m) * m


def _leaky_relu(x):
    return jnp.where(x > 0, x, x * NEG_SLOPE)


def _tpu_defaults():
    """(max row tile, vmem_limit_bytes), generation-aware and conservative."""
    max_tp, vmem = 512, 48 * 1024 * 1024            # safe on v7x (64 MiB VMEM/TC)
    try:
        kind = jax.devices()[0].device_kind.lower()
        m = re.search(r"v(\d+)", kind)
        if m and int(m.group(1)) <= 6:              # v4/v5e/v6e: 128 MiB VMEM
            max_tp, vmem = 1024, 96 * 1024 * 1024
    except Exception:
        pass
    return max_tp, vmem


def _row_tiling(P, max_tile):
    """Pick a row tile: whole array if small, else the largest divisor of P
    that is a multiple of 8 (avoids padded activation copies); pad only as a
    last resort."""
    if P <= max_tile:
        return P, P
    best = 0
    t = 8
    while t <= min(P, max_tile):
        if P % t == 0:
            best = t
        t += 8
    if best:
        return best, P
    return max_tile, _round_up(P, max_tile)


# --------------------------------- kernels ----------------------------------

def _conv1_kernel(x_ref, w_ref, s_ref, b_ref, o_ref, *, Dz, H, W, Wa, G0):
    """1x1x1 conv + BN1 + LeakyReLU for one depth plane, written directly in
    conv2's halo-padded, guard-rowed layout.  Padding planes (dp == 0 or
    dp == Dz + 1) are emitted as zeros."""
    dp = pl.program_id(1)
    o_ref[...] = jnp.zeros_like(o_ref)              # guards / borders / pad planes

    @pl.when(jnp.logical_and(dp >= 1, dp <= Dz))
    def _():
        xb = x_ref[...].astype(jnp.bfloat16)        # cast in-kernel (free VPU op)
        y = jnp.dot(xb, w_ref[...], preferred_element_type=jnp.float32)
        y = _leaky_relu(y * s_ref[...] + b_ref[...]).astype(o_ref.dtype)
        for h in range(H):                          # scatter W-row chunks
            dst = G0 + (h + 1) * Wa + 1
            o_ref[dst:dst + W, :] = y[h * W:(h + 1) * W, :]


def _conv2_kernel(x0_ref, x1_ref, x2_ref, w_ref, s_ref, b_ref, o_ref, *,
                  La, Wa, G0, H, W, cmid):
    """Grouped 3x3x3 conv (stride 1, pad 1) + BN2 + LeakyReLU for one output
    depth plane.  x{0,1,2}_ref are the 3 adjacent halo-padded planes; w_ref is
    the (27, cmid, cmid) block-diagonal per-tap weight (lane-dense).  All 27
    taps accumulate in registers; only valid interior rows are stored."""
    planes = (x0_ref, x1_ref, x2_ref)
    acc = jnp.zeros((La, cmid), jnp.float32)
    for kd in range(3):
        for t in range(9):                          # unrolled in-plane taps
            kh, kw = t // 3, t % 3
            start = G0 + (kh - 1) * Wa + (kw - 1)   # kh-component is 8-aligned
            xs = planes[kd][start:start + La, :]
            acc = acc + jnp.dot(xs, w_ref[kd * 9 + t],
                                preferred_element_type=jnp.float32)
    y = _leaky_relu(acc * s_ref[...] + b_ref[...]).astype(o_ref.dtype)
    for h in range(H):                              # keep only interior rows
        src = (h + 1) * Wa + 1
        o_ref[h * W:(h + 1) * W, :] = y[src:src + W, :]


def _conv3_kernel(h_ref, r_ref, w_ref, s_ref, b_ref, o_ref):
    """1x1x1 conv + BN3 + residual add + LeakyReLU on one row tile.  Weight is
    resident (constant block index); residual stays f32."""
    y = jnp.dot(h_ref[...], w_ref[...], preferred_element_type=jnp.float32)
    y = y * s_ref[...] + b_ref[...] + r_ref[...]
    o_ref[...] = _leaky_relu(y).astype(o_ref.dtype)


# ---------------------------- parameter setup -------------------------------

def init_params(key, in_channels, out_channels, cardinality, base_width):
    D = int(math.floor(out_channels * (base_width / 64.0)))
    G = cardinality
    cmid = D * G
    cexp = out_channels * 4            # expansion = 4
    assert in_channels == cexp, "residual add requires in_channels == out*4 (downsample=None)"

    ks = jax.random.split(key, 6)
    # PyTorch conv weight shapes:
    #   conv1 (cmid, cin, 1,1,1); conv2 (cmid, D, 3,3,3); conv3 (cexp, cmid, 1,1,1)
    w1_full = jax.random.normal(ks[0], (cmid, in_channels, 1, 1, 1), jnp.float32) * 0.05
    w2_full = jax.random.normal(ks[1], (cmid, D, 3, 3, 3), jnp.float32) * 0.05
    w3_full = jax.random.normal(ks[2], (cexp, cmid, 1, 1, 1), jnp.float32) * 0.05

    def bn_params(k, c):
        k0, k1, k2, k3 = jax.random.split(k, 4)
        gamma = 1.0 + 0.1 * jax.random.normal(k0, (c,), jnp.float32)
        beta = 0.1 * jax.random.normal(k1, (c,), jnp.float32)
        mean = 0.1 * jax.random.normal(k2, (c,), jnp.float32)
        var = 0.9 + 0.1 * jnp.abs(jax.random.normal(k3, (c,), jnp.float32))
        scale = gamma / jnp.sqrt(var + BN_EPS)
        bias = beta - mean * scale
        return (gamma, beta, mean, var), scale.reshape(1, c), bias.reshape(1, c)

    bn1_raw, s1, b1 = bn_params(ks[3], cmid)
    bn2_raw, s2, b2 = bn_params(ks[4], cmid)
    bn3_raw, s3, b3 = bn_params(ks[5], cexp)

    # Block-diagonal per-tap conv2 weight (27, cmid_in, cmid_out): only the
    # within-group DxD blocks are nonzero -- the zeros are free on the MXU and
    # make every tap matmul / store lane-dense.
    blocks = w2_full.reshape(G, D, D, 3, 3, 3)            # (g, o, i, kd, kh, kw)
    blocks = jnp.transpose(blocks, (3, 4, 5, 0, 2, 1))    # (kd, kh, kw, g, i, o)
    blocks = blocks.reshape(27, G, D, D)
    w2bd = jnp.zeros((27, cmid, cmid), jnp.float32)
    for g in range(G):
        w2bd = w2bd.at[:, g * D:(g + 1) * D, g * D:(g + 1) * D].set(blocks[:, g])

    params = {
        "w1": jnp.transpose(w1_full[:, :, 0, 0, 0]).astype(jnp.bfloat16),  # (cin, cmid)
        "w2": w2bd.astype(jnp.bfloat16),                                   # (27, cmid, cmid)
        "w3": jnp.transpose(w3_full[:, :, 0, 0, 0]).astype(jnp.bfloat16),  # (cmid, cexp)
        "s1": s1, "b1": b1, "s2": s2, "b2": b2, "s3": s3, "b3": b3,
    }
    raw = {"w1": w1_full, "w2": w2_full, "w3": w3_full,
           "bn1": bn1_raw, "bn2": bn2_raw, "bn3": bn3_raw}
    return params, raw


# ----------------------------- module forward -------------------------------

def resnext_bottleneck3d(x, params):
    """x: (N, Cin, Dz, H, W) float32, NCDHW. Returns same layout."""
    N, Cin, Dz, H, W = x.shape
    cmid = params["w1"].shape[1]
    cexp = params["w3"].shape[1]
    assert Cin == cexp

    # Halo-padded plane geometry (sublane-aligned row stride, guard rows).
    Hp, Wp = H + 2, W + 2
    Wa = _round_up(Wp, 8)            # aligned row stride of the flattened plane
    La = Hp * Wa                     # flattened padded-plane length
    G0 = Wa + 1                      # guard rows at each end (max |tap shift|)
    Lg = La + 2 * G0
    NB, NDp, HW = N * Dz, N * (Dz + 2), H * W
    P = NB * HW

    max_tp, vmem = _tpu_defaults()
    cp2d = pltpu.CompilerParams(dimension_semantics=("parallel", "parallel"),
                                vmem_limit_bytes=vmem)
    cp1d = pltpu.CompilerParams(dimension_semantics=("parallel",),
                                vmem_limit_bytes=vmem)

    # NCDHW -> channels-last rows (free reshapes from here on).
    xl = jnp.transpose(x, (0, 2, 3, 4, 1)).reshape(NB, HW, Cin)

    # -------- conv1 + bn1 + leaky_relu, emitted in conv2's padded layout -----
    k1 = functools.partial(_conv1_kernel, Dz=Dz, H=H, W=W, Wa=Wa, G0=G0)
    h1p = pl.pallas_call(
        k1,
        out_shape=jax.ShapeDtypeStruct((NDp, Lg, cmid), jnp.bfloat16),
        grid=(N, Dz + 2),
        in_specs=[
            pl.BlockSpec((None, HW, Cin),
                         lambda n, dp: (n * Dz +
                                        jnp.maximum(jnp.minimum(dp - 1, Dz - 1), 0),
                                        0, 0)),
            pl.BlockSpec((Cin, cmid), lambda n, dp: (0, 0)),   # resident weight
            pl.BlockSpec((1, cmid), lambda n, dp: (0, 0)),
            pl.BlockSpec((1, cmid), lambda n, dp: (0, 0)),
        ],
        out_specs=pl.BlockSpec((None, Lg, cmid),
                               lambda n, dp: (n * (Dz + 2) + dp, 0, 0)),
        compiler_params=cp2d,
    )(xl, params["w1"], params["s1"], params["b1"])

    # -------- conv2 (grouped 3x3x3) + bn2 + leaky_relu ------------------------
    k2 = functools.partial(_conv2_kernel, La=La, Wa=Wa, G0=G0, H=H, W=W, cmid=cmid)

    def xmap(kd):
        return lambda nb: ((nb // Dz) * (Dz + 2) + (nb % Dz) + kd, 0, 0)

    h2 = pl.pallas_call(
        k2,
        out_shape=jax.ShapeDtypeStruct((NB, HW, cmid), jnp.bfloat16),
        grid=(NB,),
        in_specs=[
            pl.BlockSpec((None, Lg, cmid), xmap(0)),
            pl.BlockSpec((None, Lg, cmid), xmap(1)),
            pl.BlockSpec((None, Lg, cmid), xmap(2)),
            pl.BlockSpec((27, cmid, cmid), lambda nb: (0, 0, 0)),  # resident weight
            pl.BlockSpec((1, cmid), lambda nb: (0, 0)),
            pl.BlockSpec((1, cmid), lambda nb: (0, 0)),
        ],
        out_specs=pl.BlockSpec((None, HW, cmid), lambda nb: (nb, 0, 0)),
        compiler_params=cp1d,
    )(h1p, h1p, h1p, params["w2"], params["s2"], params["b2"])

    # -------- conv3 + bn3 + residual + leaky_relu ----------------------------
    h2r = h2.reshape(P, cmid)        # contiguous -> free reshape
    res = xl.reshape(P, Cin)         # f32 residual
    tp, Pp = _row_tiling(P, max_tp)
    if Pp != P:                      # rare fallback; P = N*Dz*H*W is composite
        h2r = jnp.pad(h2r, ((0, Pp - P), (0, 0)))
        res = jnp.pad(res, ((0, Pp - P), (0, 0)))

    out2d = pl.pallas_call(
        _conv3_kernel,
        out_shape=jax.ShapeDtypeStruct((Pp, cexp), jnp.float32),
        grid=(Pp // tp,),
        in_specs=[
            pl.BlockSpec((tp, cmid), lambda i: (i, 0)),
            pl.BlockSpec((tp, cexp), lambda i: (i, 0)),
            pl.BlockSpec((cmid, cexp), lambda i: (0, 0)),      # resident weight
            pl.BlockSpec((1, cexp), lambda i: (0, 0)),
            pl.BlockSpec((1, cexp), lambda i: (0, 0)),
        ],
        out_specs=pl.BlockSpec((tp, cexp), lambda i: (i, 0)),
        compiler_params=cp1d,
    )(h2r, res, params["w3"], params["s3"], params["b3"])
    if Pp != P:
        out2d = out2d[:P]

    out = out2d.reshape(N, Dz, H, W, cexp)
    return jnp.transpose(out, (0, 4, 1, 2, 3))                 # back to NCDHW


# --------------------------- pure-JAX reference ------------------------------

def _reference(x, raw, groups):
    def conv3d(x, w, padding, fgc=1):
        return lax.conv_general_dilated(
            x, w, window_strides=(1, 1, 1),
            padding=[(padding, padding)] * 3,
            dimension_numbers=("NCDHW", "OIDHW", "NCDHW"),
            feature_group_count=fgc)

    def bn(x, p):
        gamma, beta, mean, var = p
        sh = (1, -1, 1, 1, 1)
        return (x - mean.reshape(sh)) / jnp.sqrt(var.reshape(sh) + BN_EPS) \
            * gamma.reshape(sh) + beta.reshape(sh)

    out = _leaky_relu(bn(conv3d(x, raw["w1"], 0), raw["bn1"]))
    out = _leaky_relu(bn(conv3d(out, raw["w2"], 1, fgc=groups), raw["bn2"]))
    out = bn(conv3d(out, raw["w3"], 0), raw["bn3"])
    return _leaky_relu(out + x)


# ----------------------------------- main ------------------------------------

if __name__ == "__main__":
    in_channels = 64
    out_channels = 16       # out_channels * expansion(4) == in_channels -> residual works
    cardinality = 4
    base_width = 8          # D = floor(16 * 8 / 64) = 2, cmid = 8
    N, Dz, H, W = 2, 4, 4, 4

    key = jax.random.PRNGKey(0)
    k_x, k_p = jax.random.split(key)
    x = jax.random.normal(k_x, (N, in_channels, Dz, H, W), jnp.float32)
    params, raw = init_params(k_p, in_channels, out_channels, cardinality, base_width)

    out = jax.block_until_ready(resnext_bottleneck3d(x, params))
    ref = jax.block_until_ready(_reference(x, raw, cardinality))

    assert out.shape == (N, out_channels * 4, Dz, H, W)
    err = float(jnp.max(jnp.abs(out - ref)))
    # bf16 matmul operands + f32 accumulation/epilogue -> loosened tolerance
    assert err < 5e-2, f"max abs err {err}"
    print("KERNEL_OK")
</pallas_src>

<mosaic_0001>
module attributes {stable_mosaic.version = 11 : i64} {
  func.func @_conv1_kernel(%arg0: i32, %arg1: i32, %arg2: memref<1x16x64xf32, #tpu.memory_space<vmem>>, %arg3: memref<64x8xbf16, #tpu.memory_space<vmem>>, %arg4: memref<1x8xf32, #tpu.memory_space<vmem>>, %arg5: memref<1x8xf32, #tpu.memory_space<vmem>>, %arg6: memref<1x66x8xbf16, #tpu.memory_space<vmem>>) attributes {dimension_semantics = [#tpu.dimension_semantics<parallel>, #tpu.dimension_semantics<parallel>], iteration_bounds = array<i64: 2, 6>, scalar_prefetch = 0 : i64, scratch_operands = 0 : i64, tpu.core_type = #tpu.core_type<tc>, window_params = [{transform_indices = @transform_0, window_bounds = array<i64: 1, 16, 64>}, {pipeline_mode = #tpu.pipeline_mode<synchronous>, transform_indices = @transform_1, window_bounds = array<i64: 64, 8>}, {pipeline_mode = #tpu.pipeline_mode<synchronous>, transform_indices = @transform_2, window_bounds = array<i64: 1, 8>}, {pipeline_mode = #tpu.pipeline_mode<synchronous>, transform_indices = @transform_3, window_bounds = array<i64: 1, 8>}, {transform_indices = @transform_4, window_bounds = array<i64: 1, 66, 8>}]} {
    %cst = arith.constant 0.000000e+00 : bf16
    %0 = vector.broadcast %cst : bf16 to vector<66x8xbf16>
    %c0 = arith.constant 0 : index
    %c0_0 = arith.constant 0 : index
    %c0_1 = arith.constant 0 : index
    %1 = vector.load %arg6[%c0, %c0_0, %c0_1] : memref<1x66x8xbf16, #tpu.memory_space<vmem>>, vector<1x66x8xbf16>
    %2 = vector.shape_cast %1 : vector<1x66x8xbf16> to vector<66x8xbf16>
    %3 = vector.shape_cast %0 : vector<66x8xbf16> to vector<1x66x8xbf16>
    tpu.vector_store %arg6[%c0, %c0_0, %c0_1], %3 {strides = array<i32>} : memref<1x66x8xbf16, #tpu.memory_space<vmem>>, vector<1x66x8xbf16>,
    %c1_i32 = arith.constant 1 : i32
    %4 = arith.cmpi sge, %arg1, %c1_i32 : i32
    %c4_i32 = arith.constant 4 : i32
    %5 = arith.cmpi sle, %arg1, %c4_i32 : i32
    %6 = arith.andi %4, %5 : i1
    %7 = arith.extui %6 : i1 to i32
    %c0_i32 = arith.constant 0 : i32
    %8 = arith.cmpi ne, %7, %c0_i32 : i32
    scf.if %8 {
      %c0_2 = arith.constant 0 : index
      %c0_3 = arith.constant 0 : index
      %c0_4 = arith.constant 0 : index
      %9 = vector.load %arg2[%c0_2, %c0_3, %c0_4] : memref<1x16x64xf32, #tpu.memory_space<vmem>>, vector<1x16x64xf32>
      %10 = vector.shape_cast %9 : vector<1x16x64xf32> to vector<16x64xf32>
      %11 = arith.truncf %10 : vector<16x64xf32> to vector<16x64xbf16>
      %c0_5 = arith.constant 0 : index
      %c0_6 = arith.constant 0 : index
      %12 = vector.load %arg3[%c0_5, %c0_6] : memref<64x8xbf16, #tpu.memory_space<vmem>>, vector<64x8xbf16>
      %cst_7 = arith.constant dense<0.000000e+00> : vector<16x8xf32>
      %13 = tpu.matmul %11, %12, %cst_7 {dimension_numbers = #tpu.dot_dimension_numbers<[1], [0], [0], [1], [0, 0, 1, 1], [], []>} : vector<16x64xbf16>, vector<64x8xbf16>, vector<16x8xf32> -> vector<16x8xf32>
      %c0_8 = arith.constant 0 : index
      %c0_9 = arith.constant 0 : index
      %14 = vector.load %arg4[%c0_8, %c0_9] : memref<1x8xf32, #tpu.memory_space<vmem>>, vector<1x8xf32>
      %15 = vector.broadcast %14 : vector<1x8xf32> to vector<16x8xf32>
      %16 = arith.mulf %13, %15 : vector<16x8xf32>
      %c0_10 = arith.constant 0 : index
      %c0_11 = arith.constant 0 : index
      %17 = vector.load %arg5[%c0_10, %c0_11] : memref<1x8xf32, #tpu.memory_space<vmem>>, vector<1x8xf32>
      %18 = vector.broadcast %17 : vector<1x8xf32> to vector<16x8xf32>
      %19 = arith.addf %16, %18 : vector<16x8xf32>
      %cst_12 = arith.constant 0.000000e+00 : f32
      %20 = vector.broadcast %cst_12 : f32 to vector<16x8xf32>
      %21 = arith.cmpf ogt, %19, %20 : vector<16x8xf32>
      %cst_13 = arith.constant 0.00999999977 : f32
      %22 = vector.broadcast %cst_13 : f32 to vector<16x8xf32>
      %23 = arith.mulf %19, %22 : vector<16x8xf32>
      %24 = arith.select %21, %19, %23 : vector<16x8xi1>, vector<16x8xf32>
      %25 = arith.truncf %24 : vector<16x8xf32> to vector<16x8xbf16>
      %26 = vector.extract_strided_slice %25 {offsets = [0, 0], sizes = [4, 8], strides = [1, 1]} : vector<16x8xbf16> to vector<4x8xbf16>
      %c0_14 = arith.constant 0 : index
      %c18 = arith.constant 18 : index
      %c0_15 = arith.constant 0 : index
      %27 = vector.load %arg6[%c0_14, %c18, %c0_15] : memref<1x66x8xbf16, #tpu.memory_space<vmem>>, vector<1x4x8xbf16>
      %28 = vector.shape_cast %27 : vector<1x4x8xbf16> to vector<4x8xbf16>
      %29 = vector.shape_cast %26 : vector<4x8xbf16> to vector<1x4x8xbf16>
      tpu.vector_store %arg6[%c0_14, %c18, %c0_15], %29 {strides = array<i32>} : memref<1x66x8xbf16, #tpu.memory_space<vmem>>, vector<1x4x8xbf16>,
      %30 = vector.extract_strided_slice %25 {offsets = [4, 0], sizes = [4, 8], strides = [1, 1]} : vector<16x8xbf16> to vector<4x8xbf16>
      %c0_16 = arith.constant 0 : index
      %c26 = arith.constant 26 : index
      %c0_17 = arith.constant 0 : index
      %31 = vector.load %arg6[%c0_16, %c26, %c0_17] : memref<1x66x8xbf16, #tpu.memory_space<vmem>>, vector<1x4x8xbf16>
      %32 = vector.shape_cast %31 : vector<1x4x8xbf16> to vector<4x8xbf16>
      %33 = vector.shape_cast %30 : vector<4x8xbf16> to vector<1x4x8xbf16>
      tpu.vector_store %arg6[%c0_16, %c26, %c0_17], %33 {strides = array<i32>} : memref<1x66x8xbf16, #tpu.memory_space<vmem>>, vector<1x4x8xbf16>,
      %34 = vector.extract_strided_slice %25 {offsets = [8, 0], sizes = [4, 8], strides = [1, 1]} : vector<16x8xbf16> to vector<4x8xbf16>
      %c0_18 = arith.constant 0 : index
      %c34 = arith.constant 34 : index
      %c0_19 = arith.constant 0 : index
      %35 = vector.load %arg6[%c0_18, %c34, %c0_19] : memref<1x66x8xbf16, #tpu.memory_space<vmem>>, vector<1x4x8xbf16>
      %36 = vector.shape_cast %35 : vector<1x4x8xbf16> to vector<4x8xbf16>
      %37 = vector.shape_cast %34 : vector<4x8xbf16> to vector<1x4x8xbf16>
      tpu.vector_store %arg6[%c0_18, %c34, %c0_19], %37 {strides = array<i32>} : memref<1x66x8xbf16, #tpu.memory_space<vmem>>, vector<1x4x8xbf16>,
      %38 = vector.extract_strided_slice %25 {offsets = [12, 0], sizes = [4, 8], strides = [1, 1]} : vector<16x8xbf16> to vector<4x8xbf16>
      %c0_20 = arith.constant 0 : index
      %c42 = arith.constant 42 : index
      %c0_21 = arith.constant 0 : index
      %39 = vector.load %arg6[%c0_20, %c42, %c0_21] : memref<1x66x8xbf16, #tpu.memory_space<vmem>>, vector<1x4x8xbf16>
      %40 = vector.shape_cast %39 : vector<1x4x8xbf16> to vector<4x8xbf16>
      %41 = vector.shape_cast %38 : vector<4x8xbf16> to vector<1x4x8xbf16>
      tpu.vector_store %arg6[%c0_20, %c42, %c0_21], %41 {strides = array<i32>} : memref<1x66x8xbf16, #tpu.memory_space<vmem>>, vector<1x4x8xbf16>,
    } else {
    }
    return
  }
  func.func @transform_0(%arg0: i32, %arg1: i32) -> (i32, i32, i32) {
    %c4_i32 = arith.constant 4 : i32
    %0 = arith.muli %arg0, %c4_i32 : i32
    %c1_i32 = arith.constant 1 : i32
    %1 = arith.subi %arg1, %c1_i32 : i32
    %c3_i32 = arith.constant 3 : i32
    %2 = arith.minsi %1, %c3_i32 : i32
    %c0_i32 = arith.constant 0 : i32
    %3 = arith.maxsi %2, %c0_i32 : i32
    %4 = arith.addi %0, %3 : i32
    %c0_i32_0 = arith.constant 0 : i32
    %c0_i32_1 = arith.constant 0 : i32
    %c0_i32_2 = arith.constant 0 : i32
    return %4, %c0_i32_0, %c0_i32_1 : i32, i32, i32
  }
  func.func @transform_1(%arg0: i32, %arg1: i32) -> (i32, i32) {
    %c0_i32 = arith.constant 0 : i32
    %c0_i32_0 = arith.constant 0 : i32
    %c0_i32_1 = arith.constant 0 : i32
    return %c0_i32, %c0_i32_0 : i32, i32
  }
  func.func @transform_2(%arg0: i32, %arg1: i32) -> (i32, i32) {
    %c0_i32 = arith.constant 0 : i32
    %c0_i32_0 = arith.constant 0 : i32
    %c0_i32_1 = arith.constant 0 : i32
    return %c0_i32, %c0_i32_0 : i32, i32
  }
  func.func @transform_3(%arg0: i32, %arg1: i32) -> (i32, i32) {
    %c0_i32 = arith.constant 0 : i32
    %c0_i32_0 = arith.constant 0 : i32
    %c0_i32_1 = arith.constant 0 : i32
    return %c0_i32, %c0_i32_0 : i32, i32
  }
  func.func @transform_4(%arg0: i32, %arg1: i32) -> (i32, i32, i32) {
    %c6_i32 = arith.constant 6 : i32
    %0 = arith.muli %arg0, %c6_i32 : i32
    %1 = arith.addi %0, %arg1 : i32
    %c0_i32 = arith.constant 0 : i32
    %c0_i32_0 = arith.constant 0 : i32
    %c0_i32_1 = arith.constant 0 : i32
    return %1, %c0_i32, %c0_i32_0 : i32, i32, i32
  }
}

</mosaic_0001>

<bundles_post_ra>
// kernel: tpu_custom_call.1
= control target key start
LH: loop header
LB: loop body
LE: loop exit
PB: predicated region body
PF: predicated region fallthrough
CT: control target
= control target key end

     0   :  { %9 = vsyncpa [#allocation3], 0  ;;  %s967_s0 = inlined_call_operand.hbm [shape: f32[8,16,64], index: 0, kind: input, shape index: {}]   ;;  %s968_s1 = inlined_call_operand.vmem [shape: bf16[64,8], index: 1, kind: input, shape index: {}]   ;;  %s969_s2 = inlined_call_operand.vmem [shape: f32[1,8], index: 2, kind: input, shape index: {}]   ;;  %s970_s3 = inlined_call_operand.vmem [shape: f32[1,8], index: 3, kind: input, shape index: {}]   ;;  %s971_s4 = inlined_call_operand.vmem [shape: bf16[12,66,8], index: 4, kind: output, shape index: {}]  }
   0x1   :  { %11 = vsyncpa [#allocation3 + $0x1], 0  ;;  %s777_s15 = smov 0   ;;  %s779_s16 = smov 0  }
   0x2   :  { %s781_s17 = smov 0   ;;  %s783_s18 = smov 0  }
   0x3   :  { %s785_s19 = smov 0   ;;  %s787_s20 = smov 0  }
   0x4   :  { %s789_s21 = smov 0   ;;  %s791_s22 = smov 0  }
   0x5 LB: > { %s497_s23 = sadd.s32 4294967295, %s744_s22   ;;  %s26_s24 = sadd.s32 1, %s736_s20  ;;  %s744_s22 = sphi %s791_s22, %s17_s22   ;;  %s740_s21 = sphi %s789_s21, %s981_s21   ;;  %s736_s20 = sphi %s787_s20, %s980_s20   ;;  %s732_s19 = sphi %s785_s19, %s979_s19   ;;  %s728_s18 = sphi %s783_s18, %s978_s18   ;;  %s724_s17 = sphi %s781_s17, %s977_s17   ;;  %s720_s16 = sphi %s779_s16, %s976_s16   ;;  %s716_s15 = sphi %s777_s15, %s975_s15  }
   0x6   : > { %p27_p0 = scmp.ge.s32.totalorder %s26_s24, 6  ;;  %s29_s25 = sadd.s32 1, %s740_s21 }
   0x7   : > { %s499_s26 = sshll.u32 %s740_s21, 2  ;;  %s500_s27 = sadd.s32 4294967295, %s736_s20 }
   0x8   : > { %s983_s24 = smov (%p27_p0, %s26_s24), 0  ;;  %s985_s25 = smov (!%p27_p0, %s29_s25), %s740_s21 }
   0x9   : > { %p35_p1 = scmp.lt.s32.totalorder %s500_s27, 3  ;;  %p501_p2 = scmp.gt.s32.totalorder %s500_s27, 0 }
   0xa   : > { %p31_p3 = scmp.ge.s32.totalorder %s985_s25, 2  ;;  %s507_s28 = sadd.s32 4294967295, %s983_s24 }
   0xb   : > { %s987_s27 = smov (!%p35_p1, %s500_s27), 3  ;;  %p42_p4 = scmp.lt.s32.totalorder %s507_s28, 3 }
   0xc   : > { %s989_s25 = smov (%p31_p3, %s985_s25), 0  ;;  %s991_s27 = smov (!%p501_p2, %s987_s27), 0 }
   0xd   : > { %s506_s29 = sshll.u32 %s989_s25, 2  ;;  %s39_s30 = sadd.s32 %s991_s27, %s499_s26 }
   0xe   : > { %p508_p5 = scmp.gt.s32.totalorder %s507_s28, 0  ;;  %s993_s28 = smov (!%p42_p4, %s507_s28), 3 }
   0xf   : > { %s50_s5 = sadd.s32 1, %s724_s17  ;;  %p57_p6 = scmp.ne.s32.totalorder %s724_s17, %s720_s16 }
  0x10   : > { %s995_s28 = smov (!%p508_p5, %s993_s28), 0  ;;  %p58_p7 = scmp.eq.s32.totalorder %s744_s22, 0 }
  0x11   : > { %p63_p8 = scmp.ne.s32.totalorder %s720_s16, %s716_s15  ;;  %s46_s6 = sadd.s32 %s995_s28, %s506_s29 }
  0x12   : > { %p64_p9 = scmp.eq.s32.totalorder %s497_s23, 0  ;;  %s47_s7 = ssub.s32 %s39_s30, %s46_s6 }
  0x13   : > { %p59_p10 = por %p58_p7, %p57_p6  ;;  %p48_p11 = scmp.eq.s32.totalorder %s47_s7, 0 }
  0x14   : > { %p835_p12 = por %p64_p9, %p63_p8  ;;  %p574_p13 = scmp.lt.s32.totalorder %s744_s22, 12 }
  0x15   : > { %s841_s9 = scalar_select %p48_p11, %s724_s17, %s50_s5  }
  0x16   : > { %s189_s10 = sand.u32 1, %s724_s17   ;;  %s547_s11 = sshll.u32 %s39_s30, 8 }
  0x17   : > { %s515_s12 = sshll.u32 %s189_s10, 4  ;;  %s847_s26 = scalar_lea.hbm %s967_s0, %s547_s11 }
  0x18   : > { %s193_s15 = scalar_lea.vmem [#allocation2], %s515_s12  ;;  %p849_p0 = pnand %p574_p13, %p59_p10 }
  0x19   : > { %s207_s23 = sshll.u32 %s193_s15, 4  ;;  %s855_s28 = scalar_lea.sflag [#allocation3], %s189_s10  ;;  %s853_s23 = int_to_ptr.vmem [resolvable:$true] %s207_s23 }
  0x1a   : > { %s648_s29 = scalar_lea.hbm %s847_s26, 256  ;;  %p650_p2 = pneg %p849_p0 }
  0x1b   : > { %p649_p1 = scmp.ne.s32.totalorder %s847_s26, %s648_s29  ;;  %s653_s6 = scalar_lea.hbm %s967_s0, 2048 }
  0x1c   : > { %p654_p5 = scmp.lt.u32.totalorder %s847_s26, %s967_s0  ;;  %p655_p6 = scmp.lt.u32.totalorder %s653_s6, %s648_s29 }
  0x1d   : > { %p651_p3 = pnand %p650_p2, %p649_p1  ;;  %p657_p8 = scmp.lt.u32.totalorder %s648_s29, %s847_s26 }
  0x1e   : > { %p656_p7 = por %p655_p6, %p654_p5 }
  0x1f   : > { %p652_p4 = pneg %p651_p3 }
  0x20   : > { %p658_p9 = por %p657_p8, %p656_p7 }
  0x22   : > { %p659_p10 = pnand %p658_p9, %p652_p4 }
  0x24   : > { %662 = shalt.err (!%p659_p10)
}
  0x25   : > { %s663_s10 = scalar_lea.vmem %s853_s23, 256  ;;  %s746_s12 = smov [#allocation2]  }
  0x26   : > { %p664_p11 = scmp.ne.s32.totalorder %s853_s23, %s663_s10  ;;  %s668_s13 = sshll.u32 %s746_s12, 4  ;;  %s669_s13 = int_to_ptr.vmem [resolvable:$false] %s668_s13 }
  0x27   : > { %s670_s14 = scalar_lea.vmem %s669_s13, 512  ;;  %p671_p3 = scmp.lt.s32.totalorder %s853_s23, %s669_s13 }
  0x28   : > { %p666_p13 = pnand %p664_p11, %p650_p2  ;;  %p672_p5 = scmp.lt.s32.totalorder %s670_s14, %s663_s10 }
  0x2a   : > { %p667_p1 = pneg %p666_p13  ;;  %p673_p6 = por %p672_p5, %p671_p3 }
  0x2c   : > { %p674_p7 = pnand %p673_p6, %p667_p1 }
  0x2e   : > { %677 = shalt.err (!%p674_p7)
}
  0x2f   : > { %s747_s15 = smov 128   ;;  %s748_s29 = smov 8  }
  0x30   : > { %573 = dma.hbm_to_vmem [thread:$0]  (!%p849_p0), %s847_s26, 256, %s853_s23, %s855_s28, %s747_s15, %s747_s15, %s748_s29  }
  0x31   : > { %p525_p2 = scmp.ge.s32.totalorder %s744_s22, 1  ;;  %p215_p4 = scmp.lt.s32.totalorder %s744_s22, 13 }
  0x33   : > { %p216_p8 = pnand %p525_p2, %p215_p4 }
  0x34   : > { %s221_s30 = sand.u32 (!%p216_p8), 1, %s720_s16  }
  0x35   : > { %219 = sbr.rel (%p216_p8) target bundleno = 308 (0x134), region = 36  ;;  %s886_s5 = sshll.u32 (!%p216_p8), %s221_s30, 4 }
  0x36   : > { %s222_s6 = scalar_lea.sflag (!%p216_p8), [#allocation3], %s221_s30  ;;  %s225_s7 = scalar_lea.vmem (!%p216_p8), [#allocation2], %s886_s5 }
  0x3c   : > { %711 = dma.done.wait (%p835_p12), %s222_s6, 256  }
  0x3d   : > { %713 = vsyncadd (%p835_p12), %s222_s6, 4294967040  ;;  %s259_s26 = smul.u32 6, %s732_s19  ;;  %p280_p0 = scmp.ge.s32.totalorder %s728_s18, 1  ;;  %vm269_vm0 = vcmask 60416   ;;  %vm278_vm1 = vcmask 57344   ;;  %v749_v0 = vmov 0  }
  0x3e   : > { %p281_p9 = scmp.le.s32.totalorder %s728_s18, 4 }
  0x3f   : > { %s260_s23 = sadd.s32 %s728_s18, %s259_s26 }
  0x40   : > { %p261_p10 = scmp.lt.s32.totalorder %s260_s23, 11  ;;  %p897_p11 = pnand %p281_p9, %p280_p0 }
  0x41   : > { %v644_v1 = vld [vmem:[%s968_s1] sm:$0xff] (!%p897_p11)   ;;  %v750_v2 = vmov (!%p897_p11), 0.0   ;;  %v645_v3 = vld [vmem:[%s968_s1 + $0x8] sm:$0xff] (!%p897_p11)   ;;  %vm751_vm2 = vmmov (!%p897_p11), 0   ;;  %v646_v4 = vld [vmem:[%s968_s1 + $0x10] sm:$0xff] (!%p897_p11)   ;;  %vm321_vm3 = vcmask (!%p897_p11), 523264  }
  0x42   : > { %s997_s23 = smov (!%p261_p10, %s260_s23), 11  ;;  %555 = vmatprep.subr.bf16.mxu0 (!%p897_p11), %v750_v2  ;;  %563 = vmatprep.mubr.msk.bf16.mxu0 (!%p897_p11), %vm751_vm2, %v750_v2  ;;  %v647_v5 = vld [vmem:[%s968_s1 + $0x18] sm:$0xff] (!%p897_p11)   ;;  %v286_v6 = vld [vmem:[%s225_s7] sm:$0xff] (!%p897_p11)  ;;  %vm396_vm6 = vcmask (!%p897_p11), 59393  }
  0x43   : > { %s567_s28 = smul.u32 36, %s997_s23  ;;  %556 = vmatpush3.bf16.msra.mxu0 (!%p897_p11), %v644_v1  ;;  %v287_v7 = vld [vmem:[%s225_s7 + $0x8] sm:$0xff] (!%p897_p11)  ;;  %v533_v9 = vld [vmem:[%s969_s2] ss:$0 sm:$0xff] (!%p897_p11) }
  0x44   : > { %285 = sbr.rel (%p897_p11) target bundleno = 308 (0x134), region = 44  ;;  %557 = vmatprep.subr.bf16.mxu0 (!%p897_p11), %v750_v2  ;;  %v288_v8 = vpack.c.bf16 (!%p897_p11), %v287_v7, %v286_v6  ;;  %v534_v11 = vld [vmem:[%s970_s3] ss:$0 sm:$0xff] (!%p897_p11) }
  0x45   : > { %s904_s10 = scalar_lea.vmem %s971_s4, %s567_s28 }
  0x46   : > { %270 = vst.msk [vmem:[%s904_s10] sm:$0xf] %vm269_vm0, %v749_v0  ;;  %271 = vst.msk [vmem:[%s904_s10 + $0x4] sm:$0xf] %vm269_vm0, %v749_v0 }
  0x47   : > { %272 = vst.msk [vmem:[%s904_s10 + $0x8] sm:$0xf] %vm269_vm0, %v749_v0  ;;  %273 = vst.msk [vmem:[%s904_s10 + $0xc] sm:$0xf] %vm269_vm0, %v749_v0  ;;  %558 = vmatpush3.bf16.msra.mxu0 (!%p897_p11), %v645_v3 }
  0x48   : > { %274 = vst.msk [vmem:[%s904_s10 + $0x10] sm:$0xf] %vm269_vm0, %v749_v0  ;;  %275 = vst.msk [vmem:[%s904_s10 + $0x14] sm:$0xf] %vm269_vm0, %v749_v0  ;;  %559 = vmatprep.subr.bf16.mxu0 (!%p897_p11), %v750_v2 }
  0x49   : > { %276 = vst.msk [vmem:[%s904_s10 + $0x18] sm:$0xf] %vm269_vm0, %v749_v0  ;;  %277 = vst.msk [vmem:[%s904_s10 + $0x1c] sm:$0xf] %vm269_vm0, %v749_v0 }
  0x4a   : > { %279 = vst.msk [vmem:[%s904_s10 + $0x20] sm:$0x1] %vm278_vm1, %v749_v0 }
  0x4b   : > { %560 = vmatpush3.bf16.msra.mxu0 %v646_v4 }
  0x4c   : > { %561 = vmatprep.subr.bf16.mxu0 %v750_v2 }
  0x4f   : > { %562 = vmatpush3.bf16.msra.mxu0 %v647_v5 }
  0x52   : > { %564 = vmatmul.mubr.msk.bf16.vlgmr.msra.gmra.mrb[0].mxu0 %vm321_vm3, %v288_v8 }
 0x125   : > { %v359_v10 = vpop.f32.mrb[0].mxu0 }
 0x126   : > { %v373_v12 = vmul.f32 %v533_v9, %v359_v10  ;;  %v565_v13 = vpop.f32.mrb[1].mxu0 }
 0x127   : > { %v362_v14 = vpop.f32.mrb[2].mxu0 }
 0x128   : > { %v382_v15 = vadd.f32 %v534_v11, %v373_v12  ;;  %v374_v16 = vmul.f32 %v533_v9, %v362_v14  ;;  %v566_v17 = vpop.f32.mrb[3].mxu0 }
 0x12a   : > { %vm384_vm4 = vcmp.gt.f32.partialorder %v382_v15, 0.0  ;;  %v386_v18 = vmul.f32 0.01, %v382_v15  ;;  %v383_v19 = vadd.f32 %v534_v11, %v374_v16 }
 0x12c   : > { %v388_v20 = vsel %vm384_vm4, %v382_v15, %v386_v18  ;;  %vm385_vm5 = vcmp.gt.f32.partialorder %v383_v19, 0.0  ;;  %v387_v21 = vmul.f32 0.01, %v383_v19 }
 0x12d   : > { %v548_v22 = vpack.c.bf16 %v388_v20, %v388_v20 }
 0x12e   : > { %v389_v23 = vsel %vm385_vm5, %v383_v19, %v387_v21 }
 0x12f   : > { %v394_v24 = vrot.slane %v548_v22, 7  ;;  %v536_v25 = vrot.slane %v548_v22, 9  ;;  %v549_v26 = vpack.c.bf16 %v389_v23, %v389_v23 }
 0x131   : > { %397 = vst.msk [vmem:[%s904_s10 + $0x8] sm:$0x6] %vm396_vm6, %v394_v24  ;;  %401 = vst.msk [vmem:[%s904_s10 + $0xc] sm:$0x6] %vm396_vm6, %v536_v25  ;;  %v404_v27 = vrot.slane %v549_v26, 7  ;;  %v538_v28 = vrot.slane %v549_v26, 9 }
 0x133   : > { %406 = vst.msk [vmem:[%s904_s10 + $0x10] sm:$0x6] %vm396_vm6, %v404_v27  ;;  %410 = vst.msk [vmem:[%s904_s10 + $0x14] sm:$0x6] %vm396_vm6, %v538_v28 }
 0x134 PF: > { %s17_s22 = sadd.s32 1, %s744_s22   ;;  %s975_s15 = smov %s720_s16 }
 0x135   : > { %p14_p12 = scmp.ge.s32.totalorder %s17_s22, 14   ;;  %s976_s16 = smov %s724_s17 }
 0x136   : > { %s977_s17 = smov %s841_s9  ;;  %s978_s18 = smov %s736_s20 }
 0x137   : > { %s979_s19 = smov %s740_s21  ;;  %s980_s20 = smov %s983_s24 }
 0x138   : > { %s981_s21 = smov %s989_s25  ;;  %16 = sbr.rel (!%p14_p12) target bundleno = 5 (0x5), region = 80 }
 0x13f   :  { %438 = vsyncpa [#allocation3], 1 }
 0x140   :  { %440 = vsyncpa [#allocation3 + $0x1], 1 }

</bundles_post_ra>
